<compile_context>
chip_gen: v6e
topology: v6e:2x2x1
jax: 0.10.0
libtpu: 0.0.40
codegen_flags: <defaults>
</compile_context>

<pallas_src>
import math

import jax
import jax.numpy as jnp
from jax import lax
from jax.experimental import pallas as pl
from jax.experimental.pallas import tpu as pltpu


def mha_encoder_layer_kernel(x_ref, mask_ref,
                             wq_ref, bq_ref,
                             wkv_ref, bkv_ref,
                             wo_ref, bo_ref,
                             o_ref,
                             k_sc, v_sc):
    """One (batch, outer-q, inner-q) grid step.

    x_ref    : (S, D)           full sequence of this batch element (f32)
    mask_ref : (nkv, 1, c)      key-mask chunks (int32, 0 == masked key)
    o_ref    : (tq, D)          output query tile
    k_sc     : (nkv, H, d_k, c) per-chunk K^T scratch (bf16, lane-dense in c)
    v_sc     : (nkv, H, c, d_k) per-chunk V scratch (bf16)
    """
    S, D = x_ref.shape
    tq, _ = o_ref.shape
    nkv, H, d_k, c = k_sc.shape
    scale = 1.0 / math.sqrt(d_k)

    qo = pl.program_id(1)
    qi = pl.program_id(2)
    nq_in = pl.num_programs(2)

    # ---- fused K/V projection, computed once per (batch element, outer-q chunk) ----
    @pl.when(qi == 0)
    def _():
        xf = x_ref[...].astype(jnp.bfloat16)                              # (S, D)
        kv = jnp.dot(xf, wkv_ref[...],
                     preferred_element_type=jnp.float32) + bkv_ref[...]   # (S, 2D) f32
        kv = kv.astype(jnp.bfloat16)        # cast BEFORE the head shuffles (half traffic)
        # Static loops; only plain 2-D transposes (basic XLU op), done once per batch elem.
        for j in range(nkv):
            r0 = j * c
            for h in range(H):
                c0 = h * d_k
                k_sc[j, h] = kv[r0:r0 + c, c0:c0 + d_k].T          # (d_k, c) == K^T chunk
                v_sc[j, h] = kv[r0:r0 + c, D + c0:D + c0 + d_k]    # (c, d_k)

    # ---- Q projection: slice the query tile out of the already-resident full block ----
    q_start = pl.multiple_of((qo * nq_in + qi) * tq, tq)
    xq = x_ref[pl.ds(q_start, tq), :].astype(jnp.bfloat16)                # (tq, D)
    q = jnp.dot(xq, wq_ref[...],
                preferred_element_type=jnp.float32) + bq_ref[...]         # (tq, D) f32
    qh = jnp.transpose((q * scale).astype(jnp.bfloat16).reshape(tq, H, d_k),
                       (1, 0, 2))                                         # (H, tq, d_k)

    # ---- online-softmax (flash) loop over KV chunks ----
    def kv_step(j, carry):
        m, l, acc = carry
        kT = k_sc[j]                                                      # (H, d_k, c)
        vj = v_sc[j]                                                      # (H, c, d_k)
        s = jnp.einsum('hqd,hdc->hqc', qh, kT,
                       preferred_element_type=jnp.float32)                # (H, tq, c)
        mk = mask_ref[j]                                                  # (1, c)
        # masked_fill semantics: matches the reference even for fully-masked rows.
        s = jnp.where(mk[None, :, :] == 0, jnp.float32(-1e9), s)
        m_new = jnp.maximum(m, jnp.max(s, axis=-1, keepdims=True))
        alpha = jnp.exp(m - m_new)
        p = jnp.exp(s - m_new)                 # f32 exp (v5e-safe)
        l_new = alpha * l + jnp.sum(p, axis=-1, keepdims=True)
        acc_new = alpha * acc + jnp.einsum('hqc,hcd->hqd',
                                           p.astype(jnp.bfloat16), vj,
                                           preferred_element_type=jnp.float32)
        return m_new, l_new, acc_new

    m0 = jnp.full((H, tq, 1), -jnp.inf, jnp.float32)
    l0 = jnp.zeros((H, tq, 1), jnp.float32)
    a0 = jnp.zeros((H, tq, d_k), jnp.float32)
    m, l, acc = lax.fori_loop(0, nkv, kv_step, (m0, l0, a0), unroll=nkv <= 4)

    # ---- normalize AFTER the PV matmul, concat heads, output projection ----
    out_h = acc * pl.reciprocal(l, approx=True)                           # (H, tq, d_k)
    concat = jnp.transpose(out_h, (1, 0, 2)).reshape(tq, D).astype(jnp.bfloat16)
    out = jnp.dot(concat, wo_ref[...],
                  preferred_element_type=jnp.float32) + bo_ref[...]       # (tq, D) f32
    o_ref[...] = out.astype(o_ref.dtype)


def encoder_layer_forward(x, mask, params, *, num_heads: int,
                          q_tile: int | None = None, kv_chunk: int | None = None):
    """x: (B, S, D) float32; mask: (B, 1, S) int (0 == masked key position)."""
    B, S, D = x.shape
    H = num_heads
    assert D % H == 0
    d_k = D // H

    # Generation-aware VMEM budget (v7x: 64 MiB physical -> leave headroom).
    try:
        vmem_cap = int(pltpu.get_tpu_info().vmem_capacity_bytes)
    except Exception:  # pragma: no cover - conservative fallback
        vmem_cap = 64 * 1024 * 1024
    big_vmem = vmem_cap >= 100 * 1024 * 1024
    vmem_limit = min(int(vmem_cap * 3 // 4), 100 * 1024 * 1024)

    if q_tile is None:
        q_tile = 512 if big_vmem else 256
    tq = min(S, q_tile)
    while S % tq != 0:
        tq //= 2
    nq = S // tq

    if kv_chunk is None:
        kv_chunk = 512 if big_vmem else 256
    c = min(S, kv_chunk)
    while S % c != 0:
        c //= 2
    nkv = S // c

    # v7x megacore: guarantee a parallel axis of extent >= 2 even when B == 1.
    if B == 1 and nq >= 2 and nq % 2 == 0:
        gq_out, nq_in = 2, nq // 2
    else:
        gq_out, nq_in = 1, nq

    (wq, bq), (wk, bk), (wv, bv), (wo, bo) = params

    # bf16 MXU operands (weights), f32 biases. K/V weights fused into one (D, 2D) matmul.
    wq_b = wq.astype(jnp.bfloat16)
    wkv_b = jnp.concatenate([wk, wv], axis=1).astype(jnp.bfloat16)        # (D, 2D)
    wo_b = wo.astype(jnp.bfloat16)
    bq2 = bq.reshape(1, D).astype(jnp.float32)
    bkv2 = jnp.concatenate([bk, bv]).reshape(1, 2 * D).astype(jnp.float32)
    bo2 = bo.reshape(1, D).astype(jnp.float32)

    # Mask pre-chunked so the kernel only ever does leading-axis indexing.
    mask4 = mask.reshape(B, 1, S).astype(jnp.int32).reshape(B, nkv, 1, c)

    const_map = lambda b, qo, qi: (0, 0)

    def _const_spec(shape):
        # Single-buffer the never-changing weight/bias blocks (saves dead VMEM copies).
        try:
            return pl.BlockSpec(shape, const_map,
                                pipeline_mode=pl.Buffered(buffer_count=1))
        except TypeError:  # older BlockSpec without pipeline_mode
            return pl.BlockSpec(shape, const_map)

    return pl.pallas_call(
        mha_encoder_layer_kernel,
        out_shape=jax.ShapeDtypeStruct((B, S, D), x.dtype),
        grid_spec=pltpu.PrefetchScalarGridSpec(
            num_scalar_prefetch=0,
            grid=(B, gq_out, nq_in),
            in_specs=[
                pl.BlockSpec((None, S, D), lambda b, qo, qi: (b, 0, 0)),        # x (full seq)
                pl.BlockSpec((None, nkv, 1, c), lambda b, qo, qi: (b, 0, 0, 0)),  # mask chunks
                _const_spec((D, D)),        # Wq (bf16)
                _const_spec((1, D)),        # bq
                _const_spec((D, 2 * D)),    # Wkv (bf16, fused)
                _const_spec((1, 2 * D)),    # bkv
                _const_spec((D, D)),        # Wo (bf16)
                _const_spec((1, D)),        # bo
            ],
            out_specs=pl.BlockSpec((None, tq, D),
                                   lambda b, qo, qi: (b, qo * nq_in + qi, 0)),
            scratch_shapes=[
                pltpu.VMEM((nkv, H, d_k, c), jnp.bfloat16),   # K^T chunks
                pltpu.VMEM((nkv, H, c, d_k), jnp.bfloat16),   # V chunks
            ],
        ),
        compiler_params=pltpu.CompilerParams(
            dimension_semantics=("parallel", "parallel", "arbitrary"),
            vmem_limit_bytes=vmem_limit,
        ),
    )(x, mask4, wq_b, bq2, wkv_b, bkv2, wo_b, bo2)


def reference_forward(x, mask, params, *, num_heads: int):
    """Plain-JAX f32 reference matching MultiHeadedAttention.forward(x, x, x, mask)."""
    B, S, D = x.shape
    d_k = D // num_heads
    (wq, bq), (wk, bk), (wv, bv), (wo, bo) = params

    def proj(w, b):
        y = x @ w + b
        return y.reshape(B, S, num_heads, d_k).transpose(0, 2, 1, 3)       # (B, H, S, d_k)

    q, k, v = proj(wq, bq), proj(wk, bk), proj(wv, bv)
    scores = jnp.einsum("bhqd,bhkd->bhqk", q, k) / math.sqrt(d_k)
    m = mask[:, None, :, :]                                                 # (B, 1, 1, S)
    scores = jnp.where(m == 0, -1e9, scores)
    p = jax.nn.softmax(scores, axis=-1)
    o = jnp.einsum("bhqk,bhkd->bhqd", p, v)
    o = o.transpose(0, 2, 1, 3).reshape(B, S, D)
    return o @ wo + bo


def _make_params(key, D):
    ks = jax.random.split(key, 8)
    sc = 1.0 / math.sqrt(D)
    u = lambda k, shape: jax.random.uniform(k, shape, jnp.float32, -sc, sc)
    return ((u(ks[0], (D, D)), u(ks[1], (D,))),
            (u(ks[2], (D, D)), u(ks[3], (D,))),
            (u(ks[4], (D, D)), u(ks[5], (D,))),
            (u(ks[6], (D, D)), u(ks[7], (D,))))


if __name__ == "__main__":
    key = jax.random.PRNGKey(0)

    # Case 1: single q-tile / single KV chunk; B=2 is the parallel axis.
    B, S, D, H = 2, 8, 32, 4
    k1, k2, key = jax.random.split(key, 3)
    x = jax.random.normal(k1, (B, S, D), dtype=jnp.float32)
    mask = jnp.ones((B, 1, S), dtype=jnp.int32).at[1, 0, S - 2:].set(0)
    params = _make_params(k2, D)
    out = jax.block_until_ready(encoder_layer_forward(x, mask, params, num_heads=H))
    ref = reference_forward(x, mask, params, num_heads=H)
    assert out.shape == (B, S, D)
    # bf16 MXU operands + approx reciprocal => relaxed tolerance vs f32 reference.
    assert jnp.allclose(out, ref, atol=3e-2, rtol=3e-2), "case1 mismatch vs reference"

    # Case 2: B=1 (exercises the split parallel q-axis), multiple q tiles + KV chunks,
    # including a fully-masked KV chunk.
    B, S, D, H = 1, 32, 32, 4
    k1, k2, key = jax.random.split(key, 3)
    x = jax.random.normal(k1, (B, S, D), dtype=jnp.float32)
    mask = jnp.ones((B, 1, S), dtype=jnp.int32).at[0, 0, S - 10:].set(0)
    params = _make_params(k2, D)
    out = jax.block_until_ready(
        encoder_layer_forward(x, mask, params, num_heads=H, q_tile=8, kv_chunk=8))
    ref = reference_forward(x, mask, params, num_heads=H)
    assert jnp.allclose(out, ref, atol=3e-2, rtol=3e-2), "case2 mismatch vs reference"

    print("KERNEL_OK")
</pallas_src>

<mosaic_0001>
module attributes {stable_mosaic.version = 11 : i64} {
  func.func @mha_encoder_layer_kernel(%arg0: i32, %arg1: i32, %arg2: i32, %arg3: memref<1x8x32xf32, #tpu.memory_space<vmem>>, %arg4: memref<1x1x1x8xi32, #tpu.memory_space<vmem>>, %arg5: memref<32x32xbf16, #tpu.memory_space<vmem>>, %arg6: memref<1x32xf32, #tpu.memory_space<vmem>>, %arg7: memref<32x64xbf16, #tpu.memory_space<vmem>>, %arg8: memref<1x64xf32, #tpu.memory_space<vmem>>, %arg9: memref<32x32xbf16, #tpu.memory_space<vmem>>, %arg10: memref<1x32xf32, #tpu.memory_space<vmem>>, %arg11: memref<1x8x32xf32, #tpu.memory_space<vmem>>, %arg12: memref<1x4x8x8xbf16, #tpu.memory_space<vmem>>, %arg13: memref<1x4x8x8xbf16, #tpu.memory_space<vmem>>) attributes {dimension_semantics = [#tpu.dimension_semantics<parallel>, #tpu.dimension_semantics<parallel>, #tpu.dimension_semantics<arbitrary>], iteration_bounds = array<i64: 2, 1, 1>, scalar_prefetch = 0 : i64, scratch_operands = 2 : i64, tpu.core_type = #tpu.core_type<tc>, window_params = [{transform_indices = @transform_0, window_bounds = array<i64: 1, 8, 32>}, {transform_indices = @transform_1, window_bounds = array<i64: 1, 1, 1, 8>}, {pipeline_mode = #tpu.pipeline_mode<synchronous>, transform_indices = @transform_2, window_bounds = array<i64: 32, 32>}, {pipeline_mode = #tpu.pipeline_mode<synchronous>, transform_indices = @transform_3, window_bounds = array<i64: 1, 32>}, {pipeline_mode = #tpu.pipeline_mode<synchronous>, transform_indices = @transform_4, window_bounds = array<i64: 32, 64>}, {pipeline_mode = #tpu.pipeline_mode<synchronous>, transform_indices = @transform_5, window_bounds = array<i64: 1, 64>}, {pipeline_mode = #tpu.pipeline_mode<synchronous>, transform_indices = @transform_6, window_bounds = array<i64: 32, 32>}, {pipeline_mode = #tpu.pipeline_mode<synchronous>, transform_indices = @transform_7, window_bounds = array<i64: 1, 32>}, {transform_indices = @transform_8, window_bounds = array<i64: 1, 8, 32>}]} {
    %c0_i32 = arith.constant 0 : i32
    %0 = arith.cmpi eq, %arg2, %c0_i32 : i32
    %1 = arith.extui %0 : i1 to i32
    %c0_i32_0 = arith.constant 0 : i32
    %2 = arith.cmpi ne, %1, %c0_i32_0 : i32
    scf.if %2 {
      %c0_35 = arith.constant 0 : index
      %c0_36 = arith.constant 0 : index
      %c0_37 = arith.constant 0 : index
      %72 = vector.load %arg3[%c0_35, %c0_36, %c0_37] : memref<1x8x32xf32, #tpu.memory_space<vmem>>, vector<1x8x32xf32>
      %73 = vector.shape_cast %72 : vector<1x8x32xf32> to vector<8x32xf32>
      %74 = arith.truncf %73 : vector<8x32xf32> to vector<8x32xbf16>
      %c0_38 = arith.constant 0 : index
      %c0_39 = arith.constant 0 : index
      %75 = vector.load %arg7[%c0_38, %c0_39] : memref<32x64xbf16, #tpu.memory_space<vmem>>, vector<32x64xbf16>
      %cst_40 = arith.constant dense<0.000000e+00> : vector<8x64xf32>
      %76 = tpu.matmul %74, %75, %cst_40 {dimension_numbers = #tpu.dot_dimension_numbers<[1], [0], [0], [1], [0, 0, 1, 1], [], []>} : vector<8x32xbf16>, vector<32x64xbf16>, vector<8x64xf32> -> vector<8x64xf32>
      %c0_41 = arith.constant 0 : index
      %c0_42 = arith.constant 0 : index
      %77 = vector.load %arg8[%c0_41, %c0_42] : memref<1x64xf32, #tpu.memory_space<vmem>>, vector<1x64xf32>
      %78 = vector.broadcast %77 : vector<1x64xf32> to vector<8x64xf32>
      %79 = arith.addf %76, %78 : vector<8x64xf32>
      %80 = arith.truncf %79 : vector<8x64xf32> to vector<8x64xbf16>
      %81 = vector.extract_strided_slice %80 {offsets = [0, 0], sizes = [8, 8], strides = [1, 1]} : vector<8x64xbf16> to vector<8x8xbf16>
      %82 = tpu.transpose %81, [1, 0] : vector<8x8xbf16> -> vector<8x8xbf16>
      %c0_43 = arith.constant 0 : index
      %c0_44 = arith.constant 0 : index
      %c0_45 = arith.constant 0 : index
      %c0_46 = arith.constant 0 : index
      %83 = vector.load %arg12[%c0_43, %c0_44, %c0_45, %c0_46] : memref<1x4x8x8xbf16, #tpu.memory_space<vmem>>, vector<1x1x8x8xbf16>
      %84 = vector.shape_cast %83 : vector<1x1x8x8xbf16> to vector<8x8xbf16>
      %85 = vector.shape_cast %82 : vector<8x8xbf16> to vector<1x1x8x8xbf16>
      tpu.vector_store %arg12[%c0_43, %c0_44, %c0_45, %c0_46], %85 {strides = array<i32>} : memref<1x4x8x8xbf16, #tpu.memory_space<vmem>>, vector<1x1x8x8xbf16>,
      %86 = vector.extract_strided_slice %80 {offsets = [0, 32], sizes = [8, 8], strides = [1, 1]} : vector<8x64xbf16> to vector<8x8xbf16>
      %c0_47 = arith.constant 0 : index
      %c0_48 = arith.constant 0 : index
      %c0_49 = arith.constant 0 : index
      %c0_50 = arith.constant 0 : index
      %87 = vector.load %arg13[%c0_47, %c0_48, %c0_49, %c0_50] : memref<1x4x8x8xbf16, #tpu.memory_space<vmem>>, vector<1x1x8x8xbf16>
      %88 = vector.shape_cast %87 : vector<1x1x8x8xbf16> to vector<8x8xbf16>
      %89 = vector.shape_cast %86 : vector<8x8xbf16> to vector<1x1x8x8xbf16>
      tpu.vector_store %arg13[%c0_47, %c0_48, %c0_49, %c0_50], %89 {strides = array<i32>} : memref<1x4x8x8xbf16, #tpu.memory_space<vmem>>, vector<1x1x8x8xbf16>,
      %90 = vector.extract_strided_slice %80 {offsets = [0, 8], sizes = [8, 8], strides = [1, 1]} : vector<8x64xbf16> to vector<8x8xbf16>
      %91 = tpu.transpose %90, [1, 0] : vector<8x8xbf16> -> vector<8x8xbf16>
      %c0_51 = arith.constant 0 : index
      %c1 = arith.constant 1 : index
      %c0_52 = arith.constant 0 : index
      %c0_53 = arith.constant 0 : index
      %92 = vector.load %arg12[%c0_51, %c1, %c0_52, %c0_53] : memref<1x4x8x8xbf16, #tpu.memory_space<vmem>>, vector<1x1x8x8xbf16>
      %93 = vector.shape_cast %92 : vector<1x1x8x8xbf16> to vector<8x8xbf16>
      %94 = vector.shape_cast %91 : vector<8x8xbf16> to vector<1x1x8x8xbf16>
      tpu.vector_store %arg12[%c0_51, %c1, %c0_52, %c0_53], %94 {strides = array<i32>} : memref<1x4x8x8xbf16, #tpu.memory_space<vmem>>, vector<1x1x8x8xbf16>,
      %95 = vector.extract_strided_slice %80 {offsets = [0, 40], sizes = [8, 8], strides = [1, 1]} : vector<8x64xbf16> to vector<8x8xbf16>
      %c0_54 = arith.constant 0 : index
      %c1_55 = arith.constant 1 : index
      %c0_56 = arith.constant 0 : index
      %c0_57 = arith.constant 0 : index
      %96 = vector.load %arg13[%c0_54, %c1_55, %c0_56, %c0_57] : memref<1x4x8x8xbf16, #tpu.memory_space<vmem>>, vector<1x1x8x8xbf16>
      %97 = vector.shape_cast %96 : vector<1x1x8x8xbf16> to vector<8x8xbf16>
      %98 = vector.shape_cast %95 : vector<8x8xbf16> to vector<1x1x8x8xbf16>
      tpu.vector_store %arg13[%c0_54, %c1_55, %c0_56, %c0_57], %98 {strides = array<i32>} : memref<1x4x8x8xbf16, #tpu.memory_space<vmem>>, vector<1x1x8x8xbf16>,
      %99 = vector.extract_strided_slice %80 {offsets = [0, 16], sizes = [8, 8], strides = [1, 1]} : vector<8x64xbf16> to vector<8x8xbf16>
      %100 = tpu.transpose %99, [1, 0] : vector<8x8xbf16> -> vector<8x8xbf16>
      %c0_58 = arith.constant 0 : index
      %c2 = arith.constant 2 : index
      %c0_59 = arith.constant 0 : index
      %c0_60 = arith.constant 0 : index
      %101 = vector.load %arg12[%c0_58, %c2, %c0_59, %c0_60] : memref<1x4x8x8xbf16, #tpu.memory_space<vmem>>, vector<1x1x8x8xbf16>
      %102 = vector.shape_cast %101 : vector<1x1x8x8xbf16> to vector<8x8xbf16>
      %103 = vector.shape_cast %100 : vector<8x8xbf16> to vector<1x1x8x8xbf16>
      tpu.vector_store %arg12[%c0_58, %c2, %c0_59, %c0_60], %103 {strides = array<i32>} : memref<1x4x8x8xbf16, #tpu.memory_space<vmem>>, vector<1x1x8x8xbf16>,
      %104 = vector.extract_strided_slice %80 {offsets = [0, 48], sizes = [8, 8], strides = [1, 1]} : vector<8x64xbf16> to vector<8x8xbf16>
      %c0_61 = arith.constant 0 : index
      %c2_62 = arith.constant 2 : index
      %c0_63 = arith.constant 0 : index
      %c0_64 = arith.constant 0 : index
      %105 = vector.load %arg13[%c0_61, %c2_62, %c0_63, %c0_64] : memref<1x4x8x8xbf16, #tpu.memory_space<vmem>>, vector<1x1x8x8xbf16>
      %106 = vector.shape_cast %105 : vector<1x1x8x8xbf16> to vector<8x8xbf16>
      %107 = vector.shape_cast %104 : vector<8x8xbf16> to vector<1x1x8x8xbf16>
      tpu.vector_store %arg13[%c0_61, %c2_62, %c0_63, %c0_64], %107 {strides = array<i32>} : memref<1x4x8x8xbf16, #tpu.memory_space<vmem>>, vector<1x1x8x8xbf16>,
      %108 = vector.extract_strided_slice %80 {offsets = [0, 24], sizes = [8, 8], strides = [1, 1]} : vector<8x64xbf16> to vector<8x8xbf16>
      %109 = tpu.transpose %108, [1, 0] : vector<8x8xbf16> -> vector<8x8xbf16>
      %c0_65 = arith.constant 0 : index
      %c3 = arith.constant 3 : index
      %c0_66 = arith.constant 0 : index
      %c0_67 = arith.constant 0 : index
      %110 = vector.load %arg12[%c0_65, %c3, %c0_66, %c0_67] : memref<1x4x8x8xbf16, #tpu.memory_space<vmem>>, vector<1x1x8x8xbf16>
      %111 = vector.shape_cast %110 : vector<1x1x8x8xbf16> to vector<8x8xbf16>
      %112 = vector.shape_cast %109 : vector<8x8xbf16> to vector<1x1x8x8xbf16>
      tpu.vector_store %arg12[%c0_65, %c3, %c0_66, %c0_67], %112 {strides = array<i32>} : memref<1x4x8x8xbf16, #tpu.memory_space<vmem>>, vector<1x1x8x8xbf16>,
      %113 = vector.extract_strided_slice %80 {offsets = [0, 56], sizes = [8, 8], strides = [1, 1]} : vector<8x64xbf16> to vector<8x8xbf16>
      %c0_68 = arith.constant 0 : index
      %c3_69 = arith.constant 3 : index
      %c0_70 = arith.constant 0 : index
      %c0_71 = arith.constant 0 : index
      %114 = vector.load %arg13[%c0_68, %c3_69, %c0_70, %c0_71] : memref<1x4x8x8xbf16, #tpu.memory_space<vmem>>, vector<1x1x8x8xbf16>
      %115 = vector.shape_cast %114 : vector<1x1x8x8xbf16> to vector<8x8xbf16>
      %116 = vector.shape_cast %113 : vector<8x8xbf16> to vector<1x1x8x8xbf16>
      tpu.vector_store %arg13[%c0_68, %c3_69, %c0_70, %c0_71], %116 {strides = array<i32>} : memref<1x4x8x8xbf16, #tpu.memory_space<vmem>>, vector<1x1x8x8xbf16>,
    } else {
    }
    %c1_i32 = arith.constant 1 : i32
    %3 = arith.muli %arg1, %c1_i32 : i32
    %4 = arith.addi %3, %arg2 : i32
    %c8_i32 = arith.constant 8 : i32
    %5 = arith.muli %4, %c8_i32 : i32
    %6 = tpu.assume_multiple %5, 8 : i32
    %c0 = arith.constant 0 : index
    %7 = arith.index_cast %6 : i32 to index
    %c0_1 = arith.constant 0 : index
    %8 = vector.load %arg3[%c0, %7, %c0_1] : memref<1x8x32xf32, #tpu.memory_space<vmem>>, vector<1x8x32xf32>
    %9 = vector.shape_cast %8 : vector<1x8x32xf32> to vector<8x32xf32>
    %10 = arith.truncf %9 : vector<8x32xf32> to vector<8x32xbf16>
    %c0_2 = arith.constant 0 : index
    %c0_3 = arith.constant 0 : index
    %11 = vector.load %arg5[%c0_2, %c0_3] : memref<32x32xbf16, #tpu.memory_space<vmem>>, vector<32x32xbf16>
    %cst = arith.constant dense<0.000000e+00> : vector<8x32xf32>
    %12 = tpu.matmul %10, %11, %cst {dimension_numbers = #tpu.dot_dimension_numbers<[1], [0], [0], [1], [0, 0, 1, 1], [], []>} : vector<8x32xbf16>, vector<32x32xbf16>, vector<8x32xf32> -> vector<8x32xf32>
    %c0_4 = arith.constant 0 : index
    %c0_5 = arith.constant 0 : index
    %13 = vector.load %arg6[%c0_4, %c0_5] : memref<1x32xf32, #tpu.memory_space<vmem>>, vector<1x32xf32>
    %14 = vector.broadcast %13 : vector<1x32xf32> to vector<8x32xf32>
    %15 = arith.addf %12, %14 : vector<8x32xf32>
    %cst_6 = arith.constant 0.353553385 : f32
    %16 = vector.broadcast %cst_6 : f32 to vector<8x32xf32>
    %17 = arith.mulf %15, %16 : vector<8x32xf32>
    %18 = arith.truncf %17 : vector<8x32xf32> to vector<8x32xbf16>
    %19 = vector.shape_cast %18 : vector<8x32xbf16> to vector<8x4x8xbf16>
    %20 = tpu.transpose %19, [1, 0, 2] : vector<8x4x8xbf16> -> vector<4x8x8xbf16>
    %cst_7 = arith.constant 0xFF800000 : f32
    %21 = vector.broadcast %cst_7 : f32 to vector<4x8x1xf32>
    %cst_8 = arith.constant 0.000000e+00 : f32
    %22 = vector.broadcast %cst_8 : f32 to vector<4x8x1xf32>
    %cst_9 = arith.constant 0.000000e+00 : f32
    %23 = vector.broadcast %cst_9 : f32 to vector<4x8x8xf32>
    %c0_i32_10 = arith.constant 0 : i32
    %24 = arith.index_cast %c0_i32_10 : i32 to index
    %c0_11 = arith.constant 0 : index
    %c0_12 = arith.constant 0 : index
    %c0_13 = arith.constant 0 : index
    %25 = vector.load %arg12[%24, %c0_11, %c0_12, %c0_13] : memref<1x4x8x8xbf16, #tpu.memory_space<vmem>>, vector<1x4x8x8xbf16>
    %26 = vector.shape_cast %25 : vector<1x4x8x8xbf16> to vector<4x8x8xbf16>
    %27 = arith.index_cast %c0_i32_10 : i32 to index
    %c0_14 = arith.constant 0 : index
    %c0_15 = arith.constant 0 : index
    %c0_16 = arith.constant 0 : index
    %28 = vector.load %arg13[%27, %c0_14, %c0_15, %c0_16] : memref<1x4x8x8xbf16, #tpu.memory_space<vmem>>, vector<1x4x8x8xbf16>
    %29 = vector.shape_cast %28 : vector<1x4x8x8xbf16> to vector<4x8x8xbf16>
    "tpu.trace_start"() <{level = 10 : i32, message = "hqd,hdc->hqc"}> : () -> ()
    %cst_17 = arith.constant dense<0.000000e+00> : vector<4x8x8xf32>
    %30 = tpu.matmul %20, %26, %cst_17 {dimension_numbers = #tpu.dot_dimension_numbers<[2], [1], [1], [2], [0, 0, 0, 1, 1, 2], [0], [0]>} : vector<4x8x8xbf16>, vector<4x8x8xbf16>, vector<4x8x8xf32> -> vector<4x8x8xf32>
    "tpu.trace_stop"() : () -> ()
    %c0_18 = arith.constant 0 : index
    %31 = arith.index_cast %c0_i32_10 : i32 to index
    %c0_19 = arith.constant 0 : index
    %c0_20 = arith.constant 0 : index
    %32 = vector.load %arg4[%c0_18, %31, %c0_19, %c0_20] : memref<1x1x1x8xi32, #tpu.memory_space<vmem>>, vector<1x1x1x8xi32>
    %33 = vector.shape_cast %32 : vector<1x1x1x8xi32> to vector<1x8xi32>
    %34 = vector.shape_cast %33 : vector<1x8xi32> to vector<1x1x8xi32>
    %c0_i32_21 = arith.constant 0 : i32
    %35 = vector.broadcast %c0_i32_21 : i32 to vector<1x1x8xi32>
    %36 = arith.cmpi eq, %34, %35 : vector<1x1x8xi32>
    %cst_22 = arith.constant -1.000000e+09 : f32
    %37 = vector.shape_cast %36 : vector<1x1x8xi1> to vector<1x1x8xi1>
    %38 = vector.broadcast %37 : vector<1x1x8xi1> to vector<4x8x8xi1>
    %39 = vector.broadcast %cst_22 : f32 to vector<4x8x8xf32>
    %40 = arith.select %38, %39, %30 : vector<4x8x8xi1>, vector<4x8x8xf32>
    %cst_23 = arith.constant dense<0xFF800000> : vector<4x8xf32>
    %41 = vector.multi_reduction <maximumf>, %40, %cst_23 [2] : vector<4x8x8xf32> to vector<4x8xf32>
    %42 = vector.shape_cast %41 : vector<4x8xf32> to vector<4x8x1xf32>
    %43 = arith.maximumf %21, %42 : vector<4x8x1xf32>
    %44 = arith.subf %21, %43 : vector<4x8x1xf32>
    %45 = math.exp %44 : vector<4x8x1xf32>
    %46 = vector.broadcast %43 : vector<4x8x1xf32> to vector<4x8x8xf32>
    %47 = arith.subf %40, %46 : vector<4x8x8xf32>
    %48 = math.exp %47 : vector<4x8x8xf32>
    %49 = arith.mulf %45, %22 : vector<4x8x1xf32>
    %cst_24 = arith.constant dense<0.000000e+00> : vector<4x8xf32>
    %50 = vector.multi_reduction <add>, %48, %cst_24 [2] : vector<4x8x8xf32> to vector<4x8xf32>
    %51 = vector.shape_cast %50 : vector<4x8xf32> to vector<4x8x1xf32>
    %52 = arith.addf %49, %51 : vector<4x8x1xf32>
    %53 = vector.broadcast %45 : vector<4x8x1xf32> to vector<4x8x8xf32>
    %54 = arith.mulf %53, %23 : vector<4x8x8xf32>
    %55 = arith.truncf %48 : vector<4x8x8xf32> to vector<4x8x8xbf16>
    "tpu.trace_start"() <{level = 10 : i32, message = "hqc,hcd->hqd"}> : () -> ()
    %cst_25 = arith.constant dense<0.000000e+00> : vector<4x8x8xf32>
    %56 = tpu.matmul %55, %29, %cst_25 {dimension_numbers = #tpu.dot_dimension_numbers<[2], [1], [1], [2], [0, 0, 0, 1, 1, 2], [0], [0]>} : vector<4x8x8xbf16>, vector<4x8x8xbf16>, vector<4x8x8xf32> -> vector<4x8x8xf32>
    "tpu.trace_stop"() : () -> ()
    %57 = arith.addf %54, %56 : vector<4x8x8xf32>
    %c1_i32_26 = arith.constant 1 : i32
    %58 = tpu.reciprocal %52 {approx = true} : vector<4x8x1xf32> -> vector<4x8x1xf32>
    %59 = vector.broadcast %58 : vector<4x8x1xf32> to vector<4x8x8xf32>
    %60 = arith.mulf %57, %59 : vector<4x8x8xf32>
    %61 = tpu.transpose %60, [1, 0, 2] : vector<4x8x8xf32> -> vector<8x4x8xf32>
    %62 = vector.shape_cast %61 : vector<8x4x8xf32> to vector<8x32xf32>
    %63 = arith.truncf %62 : vector<8x32xf32> to vector<8x32xbf16>
    %c0_27 = arith.constant 0 : index
    %c0_28 = arith.constant 0 : index
    %64 = vector.load %arg9[%c0_27, %c0_28] : memref<32x32xbf16, #tpu.memory_space<vmem>>, vector<32x32xbf16>
    %cst_29 = arith.constant dense<0.000000e+00> : vector<8x32xf32>
    %65 = tpu.matmul %63, %64, %cst_29 {dimension_numbers = #tpu.dot_dimension_numbers<[1], [0], [0], [1], [0, 0, 1, 1], [], []>} : vector<8x32xbf16>, vector<32x32xbf16>, vector<8x32xf32> -> vector<8x32xf32>
    %c0_30 = arith.constant 0 : index
    %c0_31 = arith.constant 0 : index
    %66 = vector.load %arg10[%c0_30, %c0_31] : memref<1x32xf32, #tpu.memory_space<vmem>>, vector<1x32xf32>
    %67 = vector.broadcast %66 : vector<1x32xf32> to vector<8x32xf32>
    %68 = arith.addf %65, %67 : vector<8x32xf32>
    %c0_32 = arith.constant 0 : index
    %c0_33 = arith.constant 0 : index
    %c0_34 = arith.constant 0 : index
    %69 = vector.load %arg11[%c0_32, %c0_33, %c0_34] : memref<1x8x32xf32, #tpu.memory_space<vmem>>, vector<1x8x32xf32>
    %70 = vector.shape_cast %69 : vector<1x8x32xf32> to vector<8x32xf32>
    %71 = vector.shape_cast %68 : vector<8x32xf32> to vector<1x8x32xf32>
    tpu.vector_store %arg11[%c0_32, %c0_33, %c0_34], %71 {strides = array<i32>} : memref<1x8x32xf32, #tpu.memory_space<vmem>>, vector<1x8x32xf32>,
    return
  }
  func.func @transform_0(%arg0: i32, %arg1: i32, %arg2: i32) -> (i32, i32, i32) {
    %c0_i32 = arith.constant 0 : i32
    %c0_i32_0 = arith.constant 0 : i32
    %c0_i32_1 = arith.constant 0 : i32
    return %arg0, %c0_i32, %c0_i32_0 : i32, i32, i32
  }
  func.func @transform_1(%arg0: i32, %arg1: i32, %arg2: i32) -> (i32, i32, i32, i32) {
    %c0_i32 = arith.constant 0 : i32
    %c0_i32_0 = arith.constant 0 : i32
    %c0_i32_1 = arith.constant 0 : i32
    %c0_i32_2 = arith.constant 0 : i32
    return %arg0, %c0_i32, %c0_i32_0, %c0_i32_1 : i32, i32, i32, i32
  }
  func.func @transform_2(%arg0: i32, %arg1: i32, %arg2: i32) -> (i32, i32) {
    %c0_i32 = arith.constant 0 : i32
    %c0_i32_0 = arith.constant 0 : i32
    %c0_i32_1 = arith.constant 0 : i32
    return %c0_i32, %c0_i32_0 : i32, i32
  }
  func.func @transform_3(%arg0: i32, %arg1: i32, %arg2: i32) -> (i32, i32) {
    %c0_i32 = arith.constant 0 : i32
    %c0_i32_0 = arith.constant 0 : i32
    %c0_i32_1 = arith.constant 0 : i32
    return %c0_i32, %c0_i32_0 : i32, i32
  }
  func.func @transform_4(%arg0: i32, %arg1: i32, %arg2: i32) -> (i32, i32) {
    %c0_i32 = arith.constant 0 : i32
    %c0_i32_0 = arith.constant 0 : i32
    %c0_i32_1 = arith.constant 0 : i32
    return %c0_i32, %c0_i32_0 : i32, i32
  }
  func.func @transform_5(%arg0: i32, %arg1: i32, %arg2: i32) -> (i32, i32) {
    %c0_i32 = arith.constant 0 : i32
    %c0_i32_0 = arith.constant 0 : i32
    %c0_i32_1 = arith.constant 0 : i32
    return %c0_i32, %c0_i32_0 : i32, i32
  }
  func.func @transform_6(%arg0: i32, %arg1: i32, %arg2: i32) -> (i32, i32) {
    %c0_i32 = arith.constant 0 : i32
    %c0_i32_0 = arith.constant 0 : i32
    %c0_i32_1 = arith.constant 0 : i32
    return %c0_i32, %c0_i32_0 : i32, i32
  }
  func.func @transform_7(%arg0: i32, %arg1: i32, %arg2: i32) -> (i32, i32) {
    %c0_i32 = arith.constant 0 : i32
    %c0_i32_0 = arith.constant 0 : i32
    %c0_i32_1 = arith.constant 0 : i32
    return %c0_i32, %c0_i32_0 : i32, i32
  }
  func.func @transform_8(%arg0: i32, %arg1: i32, %arg2: i32) -> (i32, i32, i32) {
    %c1_i32 = arith.constant 1 : i32
    %0 = arith.muli %arg1, %c1_i32 : i32
    %1 = arith.addi %0, %arg2 : i32
    %c0_i32 = arith.constant 0 : i32
    %c0_i32_0 = arith.constant 0 : i32
    return %arg0, %1, %c0_i32 : i32, i32, i32
  }
}

</mosaic_0001>

<bundles_post_ra>
// kernel: tpu_custom_call.1
= control target key start
LH: loop header
LB: loop body
LE: loop exit
PB: predicated region body
PF: predicated region fallthrough
CT: control target
= control target key end

     0   :  { %s2623_s0 = inlined_call_operand.hbm [shape: f32[2,8,32], index: 0, kind: input, shape index: {}]   ;;  %s2624_s1 = inlined_call_operand.hbm [shape: s32[2,1,1,8], index: 1, kind: input, shape index: {}]   ;;  %s2625_s2 = inlined_call_operand.hbm [shape: bf16[32,32], index: 2, kind: input, shape index: {}]   ;;  %s2626_s3 = inlined_call_operand.vmem [shape: f32[1,32], index: 3, kind: input, shape index: {}]   ;;  %s2627_s4 = inlined_call_operand.hbm [shape: bf16[32,64], index: 4, kind: input, shape index: {}]   ;;  %s2628_s5 = inlined_call_operand.vmem [shape: f32[1,64], index: 5, kind: input, shape index: {}]   ;;  %s2629_s6 = inlined_call_operand.hbm [shape: bf16[32,32], index: 6, kind: input, shape index: {}]   ;;  %s2630_s7 = inlined_call_operand.vmem [shape: f32[1,32], index: 7, kind: input, shape index: {}]   ;;  %s2631_s8 = inlined_call_operand.hbm [shape: f32[2,8,32], index: 8, kind: output, shape index: {}]  }
   0x1   :  { %2638 = sst [smem:[#allocation23_spill]] %s2623_s0 }
   0x2   :  { %2639 = sst [smem:[#allocation24_spill]] %s2625_s2 }
   0x3   :  { %2640 = sst [smem:[#allocation25_spill]] %s2627_s4 }
   0x4   :  { %2641 = sst [smem:[#allocation26_spill]] %s2629_s6 }
   0x5   :  { %13 = vsyncpa [#allocation5], 0 }
   0x6   :  { %15 = vsyncpa [#allocation5 + $0x1], 0 }
   0x7   :  { %16 = vsyncpa [#allocation8], 0 }
   0x8   :  { %18 = vsyncpa [#allocation8 + $0x1], 0 }
   0x9   :  { %19 = vsyncpa [#allocation11], 0 }
   0xa   :  { %20 = vsyncpa [#allocation6], 0 }
   0xb   :  { %22 = vsyncpa [#allocation6 + $0x1], 0  ;;  %s2257_s27 = smov 0   ;;  %s2259_s28 = smov 0  }
   0xc   :  { %s2261_s29 = smov 0   ;;  %s2263_s30 = smov 0  }
   0xd   :  { %s2265_s9 = smov 0   ;;  %s2267_s10 = smov 0  }
   0xe LB: > { %2642 = sst [smem:[#allocation19_spill]] %s2175_s29  ;;  %s2288_s11 = sadd.s32 4294967295, %s2187_s10   ;;  %s2187_s10 = sphi %s2267_s10, %s28_s10   ;;  %s2183_s9 = sphi %s2265_s9, %s2671_s9   ;;  %s2179_s30 = sphi %s2263_s30, %s2670_s30   ;;  %s2175_s29 = sphi %s2261_s29, %s2666_s29   ;;  %s2171_s28 = sphi %s2259_s28, %s2669_s28   ;;  %s2167_s27 = sphi %s2257_s27, %s2668_s27  }
   0xf   : > { %2643 = sst [smem:[#allocation20_spill]] %s2187_s10  ;;  %s1676_s12 = sadd.s32 4294967294, %s2187_s10  }
  0x10   : > { %p67_p0 = scmp.ne.s32.totalorder %s2171_s28, %s2167_s27  ;;  %p2632_p1 = scmp.eq.s32.totalorder %s2288_s11, 0 }
  0x11   : > { %p253_p3 = scmp.eq.s32.totalorder %s1676_s12, 1  ;;  %p1677_p5 = scmp.ge.s32.totalorder %s2187_s10, 1 }
  0x12   : > { %p2297_p4 = por %p2632_p1, %p67_p0  ;;  %p260_p7 = scmp.lt.s32.totalorder %s2187_s10, 3 }
  0x13   : > { %p2302_p6 = por %p253_p3, %p67_p0  ;;  %s2189_s16 = smov [#allocation9]  }
  0x14   : > { %s2644_s13 = scalar_select %p2297_p4, 1, 0 }
  0x15   : > { %s2645_s14 = scalar_select %p2302_p6, 1, 0 }
  0x16   : > { %p2307_p8 = pnand %p1677_p5, %p260_p7  ;;  %s272_s17 = sshll.u32 %s2189_s16, 4  ;;  %s273_s17 = int_to_ptr.vmem [resolvable:$true] %s272_s17 }
  0x17   : > { %s2190_s19 = smov [#allocation10]   ;;  %s2191_s21 = smov [#allocation12]  }
  0x18   : > { %p1834_p9 = pneg %p2307_p8  ;;  %s288_s20 = sshll.u32 %s2190_s19, 4  ;;  %s289_s20 = int_to_ptr.vmem [resolvable:$true] %s288_s20 }
  0x19   : > { %s304_s22 = sshll.u32 %s2191_s21, 4  ;;  %s1972_s23 = scalar_lea.vmem %s273_s17, 256  ;;  %s305_s22 = int_to_ptr.vmem [resolvable:$true] %s304_s22 }
  0x1a   : > { %p2316_p11 = pnand %p1834_p9, %p2632_p1  ;;  %p1973_p13 = scmp.ne.s32.totalorder %s273_s17, %s1972_s23 }
  0x1b   : > { %p1980_p5 = scmp.lt.s32.totalorder %s273_s17, %s273_s17  ;;  %p1981_p7 = scmp.lt.s32.totalorder %s1972_s23, %s1972_s23 }
  0x1c   : > { %p1963_p12 = pneg %p2316_p11 }
  0x1d   : > { %p1982_p9 = por %p1981_p7, %p1980_p5 }
  0x1e   : > { %p1975_p0 = pnand %p1973_p13, %p1963_p12 }
  0x20   : > { %p1976_p3 = pneg %p1975_p0 }
  0x22   : > { %p1983_p10 = pnand %p1982_p9, %p1976_p3 }
  0x24   : > { %1986 = shalt.err (!%p1983_p10)
}
  0x25   : > { %s2192_s24 = smov 64   ;;  %s2193_s25 = smov 4  }
  0x26   : > { %s2648_s2 = sld [smem:[#allocation24_spill]]  ;;  %s1998_s16 = scalar_lea.vmem %s289_s20, 256 }
  0x27   : > { %p1999_p1 = scmp.ne.s32.totalorder %s289_s20, %s1998_s16  ;;  %p2006_p2 = scmp.lt.s32.totalorder %s289_s20, %s289_s20 }
  0x28   : > { %p2007_p6 = scmp.lt.s32.totalorder %s1998_s16, %s1998_s16 }
  0x29   : > { %p2001_p13 = pnand %p1999_p1, %p1963_p12 }
  0x2a   : > { %p2008_p5 = por %p2007_p6, %p2006_p2 }
  0x2b   : > { %p2002_p0 = pneg %p2001_p13 }
  0x2c   : > { %1837 = dma.hbm_to_vmem [thread:$0]  (!%p2316_p11), %s2648_s2, 256, %s273_s17, [#allocation8], %s2192_s24, %s2192_s24, %s2193_s25  }
  0x2d   : > { %p2009_p3 = pnand %p2008_p5, %p2002_p0 }
  0x2f   : > { %2012 = shalt.err (!%p2009_p3)
}
  0x30   : > { %s2649_s4 = sld [smem:[#allocation25_spill]]  ;;  %s2024_s17 = scalar_lea.vmem %s305_s22, 256 }
  0x31   : > { %p2025_p10 = scmp.ne.s32.totalorder %s305_s22, %s2024_s17  ;;  %p2032_p9 = scmp.lt.s32.totalorder %s305_s22, %s305_s22 }
  0x32   : > { %p2033_p13 = scmp.lt.s32.totalorder %s2024_s17, %s2024_s17 }
  0x33   : > { %p2027_p7 = pnand %p2025_p10, %p1963_p12 }
  0x34   : > { %p2034_p4 = por %p2033_p13, %p2032_p9 }
  0x35   : > { %p2028_p1 = pneg %p2027_p7 }
  0x36   : > { %1840 = dma.hbm_to_vmem [thread:$0]  (!%p2316_p11), %s2649_s4, 256, %s289_s20, [#allocation11], %s2192_s24, %s2192_s24, %s2193_s25  }
  0x37   : > { %p2035_p2 = pnand %p2034_p4, %p2028_p1 }
  0x39   : > { %2038 = shalt.err (!%p2035_p2)
}
  0x3a   : > { %s2650_s6 = sld [smem:[#allocation26_spill]]  ;;  %s54_s20 = sadd.s32 1, %s2175_s29 }
  0x3b   : > { %s47_s12 = sadd.s32 1, %s2183_s9  ;;  %p61_p4 = scmp.ne.s32.totalorder %s2175_s29, %s2171_s28 }
  0x3c   : > { %p49_p6 = scmp.ge.s32.totalorder %s47_s12, 2  ;;  %p62_p12 = scmp.eq.s32.totalorder %s2187_s10, 0 }
  0x3d   : > { %p2651_p0 = scmp.eq.s32.totalorder %s2288_s11, 1  ;;  %p1858_p3 = scmp.lt.s32.totalorder %s2187_s10, 2 }
  0x3e   : > { %s2673_s12 = smov (%p49_p6, %s47_s12), 0  ;;  %p63_p10 = por %p62_p12, %p61_p4 }
  0x3f   : > { %p2353_p5 = por %p2651_p0, %p61_p4  ;;  %2653 = sst [smem:[#allocation21_spill]] %s2673_s12 }
  0x40   : > { %1843 = dma.hbm_to_vmem [thread:$0]  (!%p2316_p11), %s2650_s6, 256, %s305_s22, [#allocation11], %s2192_s24, %s2192_s24, %s2193_s25  }
  0x41   : > { %s2361_s16 = sand.u32 1, %s2175_s29   ;;  %s51_s22 = ssub.s32 %s2183_s9, %s2673_s12 }
  0x42   : > { %p52_p11 = scmp.eq.s32.totalorder %s51_s22, 0  ;;  %s1682_s24 = sshll.u32 %s2361_s16, 3 }
  0x43   : > { %s1683_s25 = sshll.u32 %s2183_s9, 7  ;;  %s2655_s0 = sld [smem:[#allocation23_spill]] }
  0x44   : > { %s2368_s19 = scalar_select %p52_p11, %s2175_s29, %s54_s20  }
  0x45   : > { %s325_s26 = scalar_lea.vmem [#allocation4], %s1682_s24  ;;  %p2375_p7 = pnand %p1858_p3, %p63_p10 }
  0x46   : > { %2654 = sst [smem:[#allocation22_spill]] %s2368_s19  ;;  %s332_s2 = sshll.u32 %s325_s26, 4  ;;  %s333_s2 = int_to_ptr.vmem [resolvable:$true] %s332_s2 }
  0x47   : > { %s339_s6 = sand.u32 1, %s2187_s10   ;;  %s322_s22 = scalar_lea.sflag [#allocation5], %s2361_s16 }
  0x48   : > { %p2041_p1 = pneg %p2375_p7  ;;  %s2052_s20 = scalar_lea.vmem %s333_s2, 128 }
  0x49   : > { %s330_s23 = scalar_lea.hbm %s2655_s0, %s1683_s25  ;;  %p2053_p9 = scmp.ne.s32.totalorder %s333_s2, %s2052_s20 }
  0x4a   : > { %s2194_s24 = smov [#allocation4]  }
  0x4b   : > { %p2055_p13 = pnand %p2053_p9, %p2041_p1  ;;  %s2057_s25 = sshll.u32 %s2194_s24, 4  ;;  %s2058_s25 = int_to_ptr.vmem [resolvable:$false] %s2057_s25 }
  0x4c   : > { %s2059_s21 = scalar_lea.vmem %s2058_s25, 256  ;;  %p2060_p4 = scmp.lt.s32.totalorder %s333_s2, %s2058_s25 }
  0x4d   : > { %p2056_p2 = pneg %p2055_p13  ;;  %p2061_p6 = scmp.lt.s32.totalorder %s2059_s21, %s2052_s20 }
  0x4f   : > { %p2062_p12 = por %p2061_p6, %p2060_p4 }
  0x51   : > { %p2063_p0 = pnand %p2062_p12, %p2056_p2 }
  0x53   : > { %2066 = shalt.err (!%p2063_p0)
}
  0x54   : > { %1847 = dma.hbm_to_vmem [thread:$0]  (!%p2375_p7), %s330_s23, 128, %s333_s2, %s322_s22  }
  0x55   : > { %s1684_s17 = sshll.u32 %s2183_s9, 4  ;;  %s342_s26 = scalar_lea.vmem [#allocation7], %s2361_s16 }
  0x56   : > { %s349_s0 = sshll.u32 %s342_s26, 4  ;;  %s347_s24 = scalar_lea.hbm %s2624_s1, %s1684_s17  ;;  %s350_s0 = int_to_ptr.vmem [resolvable:$true] %s349_s0 }
  0x57   : > { %s340_s29 = scalar_lea.sflag [#allocation8], %s339_s6  ;;  %s2080_s25 = scalar_lea.vmem %s350_s0, 16 }
  0x58   : > { %p2081_p3 = scmp.ne.s32.totalorder %s350_s0, %s2080_s25  ;;  %s2195_s20 = smov [#allocation7]  }
  0x59   : > { %s2085_s21 = sshll.u32 %s2195_s20, 4  ;;  %s2086_s21 = int_to_ptr.vmem [resolvable:$false] %s2085_s21 }
  0x5a   : > { %p2083_p10 = pnand %p2081_p3, %p2041_p1  ;;  %s2087_s10 = scalar_lea.vmem %s2086_s21, 32 }
  0x5b   : > { %p2088_p9 = scmp.lt.s32.totalorder %s350_s0, %s2086_s21  ;;  %p2089_p13 = scmp.lt.s32.totalorder %s2087_s10, %s2080_s25 }
  0x5c   : > { %p2084_p11 = pneg %p2083_p10 }
  0x5d   : > { %p2090_p2 = por %p2089_p13, %p2088_p9 }
  0x5f   : > { %p2091_p4 = pnand %p2090_p2, %p2084_p11 }
  0x61   : > { %2094 = shalt.err (!%p2091_p4)
}
  0x62   : > { %1850 = dma.hbm_to_vmem [thread:$0]  (!%p2375_p7), %s347_s24, 16, %s350_s0, %s340_s29  }
  0x63   : > { %358 = sbr.rel (%p2307_p8) target bundleno = 1459 (0x5b3), region = 52  ;;  %s2401_s2 = sand.u32 (!%p2307_p8), 1, %s2171_s28  }
  0x64   : > { %s1686_s6 = sshll.u32 (!%p2307_p8), %s2401_s2, 3  ;;  %s361_s12 = scalar_lea.sflag (!%p2307_p8), [#allocation5], %s2401_s2 }
  0x65   : > { %s364_s10 = scalar_lea.vmem (!%p2307_p8), [#allocation4], %s1686_s6  ;;  %p2657_p1 = scmp.ne.s32.totalorder (!%p2307_p8), %s2644_s13, 0 }
  0x68   : > { %2146 = dma.done.wait (%p2657_p1), %s361_s12, 128  }
  0x69   : > { %2148 = vsyncadd (%p2657_p1), %s361_s12, 4294967168  ;;  %s369_s0 = sand.u32 1, %s2288_s11   ;;  %s372_s29 = scalar_lea.vmem [#allocation7], %s2401_s2 }
  0x6a   : > { %s370_s4 = scalar_lea.sflag [#allocation8], %s369_s0 }
  0x6b   : > { %2150 = dma.done.wait (%p2657_p1), %s370_s4, 16  }
  0x6c   : > { %2152 = vsyncadd (%p2657_p1), %s370_s4, 4294967280  ;;  %p2658_p8 = scmp.eq.s32.totalorder %s2288_s11, 0 }
  0x6e   : > { %2154 = dma.done.wait (%p2658_p8), [#allocation8], 256   ;;  %p2659_p7 = pmov %p2658_p8 }
  0x70   : > { %2156 = vsyncadd (%p2659_p7), [#allocation8], 4294967040  ;;  %p2660_p6 = pmov %p2659_p7 }
  0x72   : > { %2158 = dma.done.wait (%p2660_p6), [#allocation11], 512   ;;  %p2661_p12 = pmov %p2660_p6 }
  0x73   : > { %v2196_v0 = vmov 0.0   ;;  %vm2197_vm0 = vmmov 0   ;;  %v1931_v1 = vld [vmem:[#allocation10 + $0x8] sm:$0xff]   ;;  %v1932_v2 = vld [vmem:[#allocation9 + $0x8] sm:$0xff]   ;;  %v1933_v3 = vld [vmem:[#allocation10] sm:$0xff]   ;;  %vm452_vm1 = vcmask 261120   ;;  %v684_v24 = vlaneseq }
  0x74   : > { %2160 = vsyncadd (%p2661_p12), [#allocation11], 4294966784  ;;  %1744 = vmatprep.subr.bf16.mxu0 %v2196_v0  ;;  %1752 = vmatprep.subr.bf16.mxu1 %v2196_v0  ;;  %v1934_v4 = vld [vmem:[#allocation9] sm:$0xff]   ;;  %v427_v5 = vld [vmem:[%s364_s10] sm:$0xff]  ;;  %s2198_s19 = smov 104   ;;  %s2199_s23 = smov 120  }
  0x75   : > { %1748 = vmatprep.mubr.msk.bf16.mxu0 %vm2197_vm0, %v2196_v0  ;;  %1756 = vmatprep.mubr.msk.bf16.mxu1 %vm2197_vm0, %v2196_v0  ;;  %v428_v6 = vpack.c.bf16 %v427_v5, %v427_v5  ;;  %v1691_v7 = vld [vmem:[%s2628_s5] ss:$0 sm:$0xff]  ;;  %s2200_s22 = smov 112   ;;  %v2201_v22 = vmov 1983009808   ;;  %v2453_v28 = vshrl.u32 %v684_v24, 7 }
  0x76   : > { %1745 = vmatpush3.bf16.msra.mxu0 %v1931_v1  ;;  %1753 = vmatpush3.bf16.msra.mxu1 %v1932_v2  ;;  %v1696_v8 = vld [vmem:[%s2626_s3] ss:$0 sm:$0xff]  ;;  %v682_v23 = vunpack.c.l.s4 %v2201_v22  ;;  %v2202_v29 = vmov 1934713408   ;;  %s2203_s17 = smov 96   ;;  %v2204_v50 = vmov 0  }
  0x77   : > { %1746 = vmatprep.subr.bf16.mxu0 %v2196_v0  ;;  %1754 = vmatprep.subr.bf16.mxu1 %v2196_v0  ;;  %v699_v30 = vunpack.c.l.s4 %v2202_v29  ;;  %vm513_vm2 = vcmask 60416   ;;  %vm854_vm3 = vcmask 1043456   ;;  %vm850_vm4 = vcmask 64512   ;;  %s2205_s26 = smov 80   ;;  %s2206_s24 = smov 72  }
  0x78   : > { %v683_v27 = vunpack.c.0.s8 %v682_v23  ;;  %s2207_s25 = smov 88   ;;  %s2208_s20 = smov 16   ;;  %vm1453_vm7 = vcmask 130048   ;;  %vm1455_vm8 = vcmask 195584  }
  0x79   : > { %v700_v34 = vunpack.c.0.s8 %v699_v30  ;;  %s2209_s21 = smov 8   ;;  %s2210_s12 = smov 24  }
  0x7a   : > { %1747 = vmatpush3.bf16.msra.mxu0 %v1933_v3  ;;  %1755 = vmatpush3.bf16.msra.mxu1 %v1934_v4  ;;  %v2456_v33 = vsub.s32 %v683_v27, %v2453_v28  ;;  %s1715_s4 = sshll.u32 %s2179_s30, 7  ;;  %s1526_s30 = scalar_lea.sflag [#allocation6], %s2401_s2 }
  0x7b   : > { %1760 = vmatprep.subr.bf16.mxu0 %v2196_v0  ;;  %1766 = vmatprep.subr.bf16.mxu1 %v2196_v0  ;;  %v2461_v38 = vsub.s32 %v700_v34, %v2453_v28  ;;  %s2574_s16 = scalar_lea.hbm %s2631_s8, %s1715_s4 }
  0x7d   : > { %1749 = vmatmul.mubr.msk.bf16.vlgmr.msra.gmra.mxu0 %vm452_vm1, %v428_v6  ;;  %1757 = vmatmul.mubr.msk.bf16.vlgmr.msra.gmra.mxu1 %vm452_vm1, %v428_v6 }
  0x7e   : > { %1762 = vmatprep.mubr.msk.bf16.mxu0 %vm2197_vm0, %v2196_v0  ;;  %1768 = vmatprep.mubr.msk.bf16.mxu1 %vm2197_vm0, %v2196_v0 }
 0x13d   : > { %v490_v9 = vpop.f32.mrf.mxu0  ;;  %v666_v11 = vpop.f32.mrf.mxu1 }
 0x13e   : > { %v491_v10 = vadd.f32 %v1691_v7, %v490_v9  ;;  %v667_v13 = vadd.f32 %v1696_v8, %v666_v11 }
 0x13f   : > { %v1750_v12 = vpop.f32.mrf.mxu0  ;;  %v1758_v15 = vpop.f32.mrf.mxu1 }
 0x140   : > { %v2447_v14 = vpack.c.bf16 %v491_v10, %v491_v10  ;;  %v672_v16 = vmul.f32 0.35355338, %v667_v13 }
 0x141   : > { %v493_v17 = vpop.f32.mrf.mxu0  ;;  %v669_v18 = vpop.f32.mrf.mxu1 }
 0x142   : > { %574 = vrot.lane.b32.xlu1 %v2447_v14, %s2198_s19  ;;  %522 = vrot.lane.b32.xlu0 %v2447_v14, %s2199_s23  ;;  %v673_v19 = vpack.c.bf16 %v672_v16, %v672_v16 }
 0x143   : > { %v1751_v20 = vpop.f32.mrf.mxu0  ;;  %v1759_v21 = vpop.f32.mrf.mxu1 }
 0x144   : > { %v687_v40 = vrot.slane %v673_v19, %v2456_v33 }
 0x146   : > { %675 = vrot.lane.b32.xlu1 %v673_v19, %s2199_s23  ;;  %548 = vrot.lane.b32.xlu0 %v2447_v14, %s2200_s22 }
 0x14a   : > { %679 = vrot.lane.b32.xlu1 %v673_v19, %s2198_s19  ;;  %677 = vrot.lane.b32.xlu0 %v673_v19, %s2200_s22 }
 0x168   : > { %497 = vxpose.xlu0.c.b16.start.end [1/1] (short) (narrow) %v2447_v14, 16 }
 0x1b4   : > { %v575_v25 = vpop.permute.xlu1 %574  ;;  %v523_v26 = vpop.permute.xlu0 %522 }
 0x1b5   : > { %525 = vxpose.xlu1.c.b16.start.end [1/1] (short) (narrow) %v523_v26, 16 }
 0x1b8   : > { %v676_v31 = vpop.permute.xlu1 %675  ;;  %v549_v32 = vpop.permute.xlu0 %548 }
 0x1b9   : > { %518 = vrot.lane.b32.xlu1 %v2447_v14, %s2203_s17  ;;  %551 = vxpose.xlu0.c.b16.start.end [1/1] (short) (narrow) %v549_v32, 16  ;;  %v721_v35 = vrot.slane %v676_v31, %v2456_v33 }
 0x1bc   : > { %v680_v36 = vpop.permute.xlu1 %679  ;;  %v678_v37 = vpop.permute.xlu0 %677 }
 0x1bd   : > { %v729_v39 = vrot.slane %v680_v36, %v2456_v33  ;;  %v695_v41 = vrot.slane %v678_v37, %v2456_v33  ;;  %577 = vxpose.xlu0.c.b16.start.end [1/1] (short) (narrow) %v575_v25, 16 }
 0x1bf   : > { %v730_v42 = vcombine.low %v721_v35, %v729_v39  ;;  %v731_v43 = vcombine.high %v721_v35, %v729_v39  ;;  %v696_v44 = vcombine.low %v687_v40, %v695_v41  ;;  %v697_v45 = vcombine.high %v687_v40, %v695_v41 }
 0x1c1   : > { %v738_v46 = vrot.slane %v730_v42, %v2461_v38  ;;  %v745_v47 = vrot.slane %v731_v43, %v2461_v38  ;;  %v704_v48 = vrot.slane %v696_v44, %v2461_v38  ;;  %v711_v49 = vrot.slane %v697_v45, %v2461_v38 }
 0x1c3   : > { %v746_v51 = vcombine.high %v738_v46, %v2204_v50  ;;  %v747_v52 = vcombine.high %v745_v47, %v2204_v50  ;;  %v753_v53 = vshrl.u32 %v738_v46, 16  ;;  %v769_v54 = vshrl.u32 %v745_v47, 16 }
 0x1c4   : > { %v712_v55 = vcombine.high %v704_v48, %v2204_v50  ;;  %v713_v56 = vcombine.high %v711_v49, %v2204_v50  ;;  %v750_v57 = vpack.i.b16 %v738_v46, %v704_v48  ;;  %v752_v58 = vshrl.u32 %v704_v48, 16 }
 0x1c5   : > { %v761_v59 = vshrl.u32 %v746_v51, 16  ;;  %v777_v60 = vshrl.u32 %v747_v52, 16  ;;  %v766_v61 = vpack.i.b16 %v745_v47, %v711_v49  ;;  %v768_v62 = vshrl.u32 %v711_v49, 16  ;;  %v1036_v49 = vld [vmem:[%s372_s29] sm:$0x1]  ;;  %s420_s29 = scalar_lea.vmem [#allocation13], %s1686_s6 }
 0x1c6   : > { %v754_v63 = vpack.i.b16 %v753_v53, %v752_v58  ;;  %v758_v1 = vpack.i.b16 %v746_v51, %v712_v55  ;;  %v760_v2 = vshrl.u32 %v712_v55, 16  ;;  %v774_v3 = vpack.i.b16 %v747_v52, %v713_v56  ;;  %s1541_s11 = sshll.u32 %s420_s29, 4  ;;  %s2211_s6 = smov [#allocation13]   ;;  %s2576_s11 = int_to_ptr.vmem [resolvable:$true] %s1541_s11 }
 0x1c7   : > { %v770_v4 = vpack.i.b16 %v769_v54, %v768_v62  ;;  %v776_v5 = vshrl.u32 %v713_v56, 16  ;;  %v780_v6 = vcombine.low %v750_v57, %v766_v61  ;;  %vm1037_vm5 = vcmp.eq.s32.totalorder %v1036_v49, 0  ;;  %s2095_s19 = scalar_lea.vmem %s2576_s11, 128  ;;  %s2099_s23 = sshll.u32 %s2211_s6, 4  ;;  %s2100_s23 = int_to_ptr.vmem [resolvable:$false] %s2099_s23 }
 0x1c8   : > { %v762_v7 = vpack.i.b16 %v761_v59, %v760_v2  ;;  %v788_v8 = vcombine.low %v758_v1, %v774_v3  ;;  %v1041_v51 = vsub.s32 0, %v2453_v28  ;;  %v1038_v52 = vsel %vm1037_vm5, 1, %v2204_v50  ;;  %p2096_p0 = scmp.ne.s32.totalorder %s2576_s11, %s2095_s19  ;;  %s2101_s22 = scalar_lea.vmem %s2100_s23, 256 }
 0x1c9   : > { %v778_v9 = vpack.i.b16 %v777_v60, %v776_v5  ;;  %v805_v10 = vcombine.low %v754_v63, %v770_v4  ;;  %v787_v11 = vrot.slane %v780_v6, %v2456_v33  ;;  %p2102_p11 = scmp.lt.s32.totalorder %s2576_s11, %s2100_s23  ;;  %p2103_p9 = scmp.lt.s32.totalorder %s2101_s22, %s2095_s19 }
 0x1ca   : > { %v795_v12 = vrot.slane %v788_v8, %v2456_v33  ;;  %v505_v13 = vpop.trf.xlu0  ;;  %v1042_v53 = vrot.slane %v1038_v52, %v1041_v51  ;;  %p2097_p3 = pnand %p2096_p0, %p2353_p5 }
 0x1cb   : > { %v813_v15 = vcombine.low %v762_v7, %v778_v9  ;;  %514 = vst.msk [vmem:[#allocation2] sm:$0xf] %vm513_vm2, %v505_v13  ;;  %v812_v17 = vrot.slane %v805_v10, %v2456_v33  ;;  %p2104_p13 = por %p2103_p9, %p2102_p11 }
 0x1cc   : > { %v796_v16 = vcombine.low %v787_v11, %v795_v12  ;;  %vm1043_vm6 = vcmp.eq.s32.totalorder %v1042_v53, 1  ;;  %p2098_p10 = pneg %p2097_p3 }
 0x1cd   : > { %v820_v18 = vrot.slane %v813_v15, %v2456_v33 }
 0x1ce   : > { %v803_v19 = vrot.slane %v796_v16, %v2461_v38  ;;  %p2105_p2 = pnand %p2104_p13, %p2098_p10 }
 0x1cf   : > { %v821_v20 = vcombine.low %v812_v17, %v820_v18 }
 0x1d0   : > { %v804_v21 = vcombine.high %v803_v19, %v2204_v50  ;;  %v833_v25 = vshrl.u32 %v803_v19, 16 }
 0x1d1   : > { %v828_v22 = vrot.slane %v821_v20, %v2461_v38 }
 0x1d2   : > { %v842_v23 = vld [vmem:[#allocation2] sm:$0xf]  ;;  %v839_v29 = vshrl.u32 %v804_v21, 16 }
 0x1d3   : > { %v856_v24 = vsel %vm854_vm3, %v842_v23, 0  ;;  %v834_v26 = vshrl.u32 %v828_v22, 16  ;;  %v829_v27 = vcombine.high %v828_v22, %v2204_v50  ;;  %v832_v30 = vpack.i.b16 %v828_v22, %v803_v19 }
 0x1d4   : > { %1761 = vmatpush3.bf16.msra.mxu0 %v856_v24 }
 0x1d5   : > { %v835_v31 = vpack.i.b16 %v834_v26, %v833_v25  ;;  %1772 = vmatprep.subr.bf16.mxu0 %v2196_v0  ;;  %v838_v32 = vpack.i.b16 %v829_v27, %v804_v21  ;;  %v840_v34 = vshrl.u32 %v829_v27, 16 }
 0x1d7   : > { %1763 = vmatmul.mubr.msk.bf16.vlgmr.msra.gmra.mxu0 %vm850_vm4, %v832_v30  ;;  %v841_v35 = vpack.i.b16 %v840_v34, %v839_v29 }
 0x1d8   : > { %1774 = vmatprep.mubr.msk.bf16.mxu0 %vm2197_vm0, %v2196_v0 }
 0x217   : > { %v533_v36 = vpop.trf.xlu1 }
 0x218   : > { %542 = vst.msk [vmem:[#allocation2 + $0x4] sm:$0xf] %vm513_vm2, %v533_v36 }
 0x21b   : > { %v559_v37 = vpop.trf.xlu0 }
 0x21c   : > { %568 = vst.msk [vmem:[#allocation2 + $0x8] sm:$0xf] %vm513_vm2, %v559_v37 }
 0x21f   : > { %v585_v39 = vpop.trf.xlu0  ;;  %v843_v40 = vld [vmem:[#allocation2 + $0x4] sm:$0xf] }
 0x220   : > { %594 = vst.msk [vmem:[#allocation2 + $0xc] sm:$0xf] %vm513_vm2, %v585_v39  ;;  %v902_v41 = vsel %vm854_vm3, %v843_v40, 0 }
 0x221   : > { %1767 = vmatpush3.bf16.msra.mxu1 %v902_v41 }
 0x222   : > { %1778 = vmatprep.subr.bf16.mxu1 %v2196_v0 }
 0x223   : > { %v844_v42 = vld [vmem:[#allocation2 + $0x8] sm:$0xf] }
 0x224   : > { %1769 = vmatmul.mubr.msk.bf16.vlgmr.msra.gmra.mxu1 %vm850_vm4, %v835_v31  ;;  %v948_v43 = vsel %vm854_vm3, %v844_v42, 0 }
 0x225   : > { %1773 = vmatpush3.bf16.msra.mxu0 %v948_v43  ;;  %1780 = vmatprep.mubr.msk.bf16.mxu1 %vm2197_vm0, %v2196_v0 }
 0x226   : > { %1784 = vmatprep.subr.bf16.mxu0 %v2196_v0 }
 0x227   : > { %v845_v44 = vld [vmem:[#allocation2 + $0xc] sm:$0xf] }
 0x228   : > { %1775 = vmatmul.mubr.msk.bf16.vlgmr.msra.gmra.mxu0 %vm850_vm4, %v838_v32  ;;  %v994_v45 = vsel %vm854_vm3, %v845_v44, 0 }
 0x229   : > { %1779 = vmatpush3.bf16.msra.mxu1 %v994_v45  ;;  %1786 = vmatprep.mubr.msk.bf16.mxu0 %vm2197_vm0, %v2196_v0 }
 0x22a   : > { %1790 = vmatprep.subr.bf16.mxu1 %v2196_v0 }
 0x22b   : > { %v519_v46 = vpop.permute.xlu1 %518 }
 0x22c   : > { %521 = vst.msk [vmem:[#allocation3] sm:$0xf] %vm513_vm2, %v519_v46  ;;  %1781 = vmatmul.mubr.msk.bf16.vlgmr.msra.gmra.mxu1 %vm850_vm4, %v841_v35 }
 0x22d   : > { %1792 = vmatprep.mubr.msk.bf16.mxu1 %vm2197_vm0, %v2196_v0 }
 0x233   : > { %v846_v47 = vld [vmem:[#allocation3] sm:$0xf] }
 0x234   : > { %v1112_v48 = vsel %vm854_vm3, %v846_v47, 0 }
 0x235   : > { %1785 = vmatpush3.bf16.msra.mxu0 %v1112_v48 }
 0x236   : > { %1796 = vmatprep.subr.bf16.mxu0 %v2196_v0 }
 0x297   : > { %v892_v54 = vpop.f32.mrf.mxu0 }
 0x298   : > { %v1044_v55 = vsel %vm1043_vm6, -1e+09, %v892_v54 }
 0x299   : > { %v1764_v56 = vpop.f32.mrf.mxu0  ;;  %v1048_v57 = vsel %vm850_vm4, %v1044_v55, -inf }
 0x29a   : > { %1049 = vmax.xlane.f32.xlu1 %v1048_v57 }
 0x29b   : > { %v895_v58 = vpop.f32.mrf.mxu0 }
 0x29d   : > { %v1765_v59 = vpop.f32.mrf.mxu0 }
 0x2e4   : > { %v938_v60 = vpop.f32.mrf.mxu1 }
 0x2e5   : > { %v1045_v61 = vsel %vm1043_vm6, -1e+09, %v938_v60 }
 0x2e6   : > { %v1770_v62 = vpop.f32.mrf.mxu1  ;;  %v1051_v63 = vsel %vm850_vm4, %v1045_v61, -inf }
 0x2e7   : > { %1052 = vmax.xlane.f32.xlu0 %v1051_v63 }
 0x2e8   : > { %v941_v28 = vpop.f32.mrf.mxu1  ;;  %v984_v50 = vpop.f32.mrf.mxu0 }
 0x2e9   : > { %v1046_v1 = vsel %vm1043_vm6, -1e+09, %v984_v50 }
 0x2ea   : > { %v1771_v2 = vpop.f32.mrf.mxu1  ;;  %v1776_v3 = vpop.f32.mrf.mxu0  ;;  %v1054_v4 = vsel %vm850_vm4, %v1046_v1, -inf }
 0x2eb   : > { %1055 = vmax.xlane.f32.xlu1 %v1054_v4 }
 0x2ec   : > { %v987_v5 = vpop.f32.mrf.mxu0  ;;  %v1030_v6 = vpop.f32.mrf.mxu1 }
 0x2ed   : > { %v1047_v7 = vsel %vm1043_vm6, -1e+09, %v1030_v6 }
 0x2ee   : > { %v1777_v8 = vpop.f32.mrf.mxu0  ;;  %v1782_v9 = vpop.f32.mrf.mxu1  ;;  %v1057_v10 = vsel %vm850_vm4, %v1047_v7, -inf }
 0x2ef   : > { %1058 = vmax.xlane.f32.xlu0 %v1057_v10 }
 0x2f0   : > { %v1033_v11 = vpop.f32.mrf.mxu1 }
 0x2f2   : > { %v1783_v12 = vpop.f32.mrf.mxu1 }
 0x2fc   : > { %569 = vrot.lane.b32.xlu1 %v2447_v14, %s2205_s26 }
 0x300   : > { %595 = vrot.lane.b32.xlu1 %v2447_v14, %s2206_s24 }
 0x305   : > { %543 = vrot.lane.b32.xlu0 %v2447_v14, %s2207_s25 }
 0x323   : > { %v1050_v13 = vpop.xlane.xlu1 %1049 }
 0x324   : > { %v1072_v15 = vsub.f32 %v1044_v55, %v1050_v13  ;;  %v1060_v54 = vsub.f32 -inf, %v1050_v13 }
 0x326   : > { %v1076_v16 = vmul.f32 1.442695, %v1072_v15  ;;  %v1064_v56 = vmul.f32 1.442695, %v1060_v54 }
 0x328   : > { %1937 = vpow2.f32 %v1076_v16 }
 0x335   : > { %v1938_v17 = vpop.eup %1937 }
 0x336   : > { %v1088_v18 = vsel %vm850_vm4, %v1938_v17, 0.0  ;;  %v1104_v19 = vpack.c.bf16 %v1938_v17, %v1938_v17 }
 0x337   : > { %1089 = vadd.xlane.f32.xlu0 %v1088_v18 }
 0x338   : > { %1787 = vmatmul.mubr.msk.bf16.vlgmr.msra.gmra.mxu0 %vm850_vm4, %v1104_v19 }
 0x339   : > { %1798 = vmatprep.mubr.msk.bf16.mxu0 %vm2197_vm0, %v2196_v0 }
 0x370   : > { %v1053_v20 = vpop.xlane.xlu0 %1052 }
 0x371   : > { %v1073_v21 = vsub.f32 %v1045_v61, %v1053_v20  ;;  %v1061_v58 = vsub.f32 -inf, %v1053_v20 }
 0x373   : > { %v1078_v22 = vmul.f32 1.442695, %v1073_v21  ;;  %v1066_v60 = vmul.f32 1.442695, %v1061_v58 }
 0x374   : > { %v1056_v23 = vpop.xlane.xlu1 %1055 }
 0x375   : > { %v1074_v24 = vsub.f32 %v1046_v1, %v1056_v23  ;;  %1939 = vpow2.f32 %v1078_v22  ;;  %v1062_v55 = vsub.f32 -inf, %v1056_v23 }
 0x377   : > { %v1080_v14 = vmul.f32 1.442695, %v1074_v24  ;;  %v1068_v57 = vmul.f32 1.442695, %v1062_v55 }
 0x378   : > { %v1059_v25 = vpop.xlane.xlu0 %1058  ;;  %v570_v26 = vpop.permute.xlu1 %569 }
 0x379   : > { %v1075_v27 = vsub.f32 %v1047_v7, %v1059_v25  ;;  %573 = vst.msk [vmem:[#allocation3 + $0x8] sm:$0xf] %vm513_vm2, %v570_v26  ;;  %1941 = vpow2.f32 %v1080_v14  ;;  %v1063_v59 = vsub.f32 -inf, %v1059_v25 }
 0x37b   : > { %v1082_v29 = vmul.f32 1.442695, %v1075_v27  ;;  %v1070_v61 = vmul.f32 1.442695, %v1063_v59 }
 0x37c   : > { %v544_v30 = vpop.permute.xlu0 %543  ;;  %v596_v31 = vpop.permute.xlu1 %595 }
 0x37d   : > { %547 = vst.msk [vmem:[#allocation3 + $0x4] sm:$0xf] %vm513_vm2, %v544_v30  ;;  %599 = vst.msk [vmem:[#allocation3 + $0xc] sm:$0xf] %vm513_vm2, %v596_v31  ;;  %1943 = vpow2.f32 %v1082_v29 }
 0x37e   : > { %1945 = vpow2.f32 %v1064_v56 }
 0x37f   : > { %1947 = vpow2.f32 %v1068_v57 }
 0x380   : > { %v848_v32 = vld [vmem:[#allocation3 + $0x8] sm:$0xf]  ;;  %1949 = vpow2.f32 %v1066_v60 }
 0x381   : > { %v1204_v34 = vsel %vm854_vm3, %v848_v32, 0  ;;  %1951 = vpow2.f32 %v1070_v61 }
 0x382   : > { %1797 = vmatpush3.bf16.msra.mxu0 %v1204_v34  ;;  %v1940_v35 = vpop.eup %1939 }
 0x383   : > { %1808 = vmatprep.subr.bf16.mxu0 %v2196_v0  ;;  %v1091_v36 = vsel %vm850_vm4, %v1940_v35, 0.0  ;;  %v1105_v42 = vpack.c.bf16 %v1940_v35, %v1940_v35 }
 0x384   : > { %v847_v37 = vld [vmem:[#allocation3 + $0x4] sm:$0xf]  ;;  %1092 = vadd.xlane.f32.xlu1 %v1091_v36  ;;  %v849_v40 = vld [vmem:[#allocation3 + $0xc] sm:$0xf] }
 0x385   : > { %v1158_v39 = vsel %vm854_vm3, %v847_v37, 0  ;;  %v1250_v45 = vsel %vm854_vm3, %v849_v40, 0 }
 0x386   : > { %1791 = vmatpush3.bf16.msra.mxu1 %v1158_v39  ;;  %v1942_v41 = vpop.eup %1941 }
 0x387   : > { %1802 = vmatprep.subr.bf16.mxu1 %v2196_v0  ;;  %v1094_v43 = vsel %vm850_vm4, %v1942_v41, 0.0  ;;  %v1106_v44 = vpack.c.bf16 %v1942_v41, %v1942_v41 }
 0x388   : > { %1095 = vadd.xlane.f32.xlu0 %v1094_v43 }
 0x389   : > { %1793 = vmatmul.mubr.msk.bf16.vlgmr.msra.gmra.mxu1 %vm850_vm4, %v1105_v42  ;;  %1799 = vmatmul.mubr.msk.bf16.vlgmr.msra.gmra.mxu0 %vm850_vm4, %v1106_v44 }
 0x38a   : > { %1803 = vmatpush3.bf16.msra.mxu1 %v1250_v45  ;;  %v1944_v46 = vpop.eup %1943  ;;  %1804 = vmatprep.mubr.msk.bf16.mxu1 %vm2197_vm0, %v2196_v0 }
 0x38b   : > { %1812 = vmatprep.mubr.msk.bf16.mxu0 %vm2197_vm0, %v2196_v0  ;;  %v1097_v47 = vsel %vm850_vm4, %v1944_v46, 0.0  ;;  %v1107_v48 = vpack.c.bf16 %v1944_v46, %v1944_v46  ;;  %v1946_v63 = vpop.eup %1945 }
 0x38c   : > { %1098 = vadd.xlane.f32.xlu0 %v1097_v47  ;;  %v1948_v28 = vpop.eup %1947  ;;  %v1084_v50 = vmul.f32 0.0, %v1946_v63 }
 0x38d   : > { %v1086_v2 = vmul.f32 0.0, %v1948_v28  ;;  %v1950_v5 = vpop.eup %1949 }
 0x38e   : > { %v1952_v6 = vpop.eup %1951  ;;  %v1085_v8 = vmul.f32 0.0, %v1950_v5 }
 0x38f   : > { %v1087_v10 = vmul.f32 0.0, %v1952_v6 }
 0x391   : > { %1805 = vmatmul.mubr.msk.bf16.vlgmr.msra.gmra.mxu1 %vm850_vm4, %v1107_v48 }
 0x3c0   : > { %v1090_v62 = vpop.xlane.xlu0 %1089 }
 0x3c1   : > { %v1100_v3 = vadd.f32 %v1090_v62, %v1084_v50  ;;  %v1936_v62 = vld [vmem:[#allocation12] sm:$0xff]  }
 0x3c3   : > { %1953 = vrcp.f32 %v1100_v3 }
 0x3d0   : > { %v1954_v17 = vpop.eup %1953 }
 0x3f8   : > { %v1148_v49 = vpop.f32.mrf.mxu0 }
 0x3f9   : > { %v1292_v13 = vadd.f32 %v1148_v49, %v1084_v50 }
 0x3fa   : > { %v1788_v51 = vpop.f32.mrf.mxu0 }
 0x3fb   : > { %v1300_v22 = vmul.f32 %v1954_v17, %v1292_v13 }
 0x3fc   : > { %v1151_v52 = vpop.f32.mrf.mxu0 }
 0x3fe   : > { %v1789_v53 = vpop.f32.mrf.mxu0 }
 0x3ff   : > { %v1935_v53 = vld [vmem:[#allocation12 + $0x8] sm:$0xff]  }
 0x400   : > { %1809 = vmatpush3.bf16.msra.mxu0 %v1935_v53 }
 0x401   : > { %1810 = vmatprep.subr.bf16.mxu0 %v2196_v0 }
 0x404   : > { %1811 = vmatpush3.bf16.msra.mxu0 %v1936_v62 }
 0x40d   : > { %v1093_v7 = vpop.xlane.xlu1 %1092 }
 0x40e   : > { %v1101_v11 = vadd.f32 %v1093_v7, %v1085_v8 }
 0x411   : > { %v1096_v1 = vpop.xlane.xlu0 %1095 }
 0x412   : > { %v1102_v4 = vadd.f32 %v1096_v1, %v1086_v2 }
 0x414   : > { %1955 = vrcp.f32 %v1102_v4 }
 0x415   : > { %v1099_v9 = vpop.xlane.xlu0 %1098  ;;  %1957 = vrcp.f32 %v1101_v11 }
 0x416   : > { %v1103_v12 = vadd.f32 %v1099_v9, %v1087_v10 }
 0x418   : > { %1959 = vrcp.f32 %v1103_v12 }
 0x421   : > { %v1956_v20 = vpop.eup %1955 }
 0x422   : > { %v1958_v32 = vpop.eup %1957 }
 0x425   : > { %v1960_v35 = vpop.eup %1959 }
 0x449   : > { %v1194_v15 = vpop.f32.mrf.mxu1  ;;  %v1240_v16 = vpop.f32.mrf.mxu0 }
 0x44a   : > { %v1294_v18 = vadd.f32 %v1240_v16, %v1086_v2  ;;  %v1293_v29 = vadd.f32 %v1194_v15, %v1085_v8 }
 0x44b   : > { %v1794_v19 = vpop.f32.mrf.mxu1  ;;  %v1800_v21 = vpop.f32.mrf.mxu0 }
 0x44c   : > { %v1302_v23 = vmul.f32 %v1956_v20, %v1294_v18  ;;  %v1301_v37 = vmul.f32 %v1958_v32, %v1293_v29  ;;  %v1710_v19 = vld [vmem:[%s2630_s7] ss:$0 sm:$0xff] }
 0x44d   : > { %v1197_v24 = vpop.f32.mrf.mxu1  ;;  %v1243_v14 = vpop.f32.mrf.mxu0 }
 0x44e   : > { %v1304_v25 = vcombine.low %v1300_v22, %v1302_v23  ;;  %v1305_v26 = vcombine.high %v1300_v22, %v1302_v23 }
 0x44f   : > { %v1795_v27 = vpop.f32.mrf.mxu1  ;;  %v1801_v30 = vpop.f32.mrf.mxu0 }
 0x450   : > { %v1312_v44 = vrot.slane %v1304_v25, %v2456_v33  ;;  %v1319_v45 = vrot.slane %v1305_v26, %v2456_v33 }
 0x451   : > { %v1286_v31 = vpop.f32.mrf.mxu1 }
 0x452   : > { %v1295_v34 = vadd.f32 %v1286_v31, %v1087_v10 }
 0x453   : > { %v1806_v36 = vpop.f32.mrf.mxu1 }
 0x454   : > { %v1303_v39 = vmul.f32 %v1960_v35, %v1295_v34 }
 0x455   : > { %v1289_v40 = vpop.f32.mrf.mxu1 }
 0x456   : > { %v1320_v41 = vcombine.low %v1301_v37, %v1303_v39  ;;  %v1321_v42 = vcombine.high %v1301_v37, %v1303_v39 }
 0x457   : > { %v1807_v43 = vpop.f32.mrf.mxu1 }
 0x458   : > { %v1328_v46 = vrot.slane %v1320_v41, %v2456_v33  ;;  %v1335_v47 = vrot.slane %v1321_v42, %v2456_v33 }
 0x45a   : > { %v1336_v48 = vcombine.low %v1312_v44, %v1328_v46  ;;  %v1337_v49 = vcombine.high %v1312_v44, %v1328_v46  ;;  %v1352_v51 = vcombine.low %v1319_v45, %v1335_v47  ;;  %v1353_v52 = vcombine.high %v1319_v45, %v1335_v47 }
 0x45c   : > { %v1344_v54 = vrot.slane %v1336_v48, %v2461_v38  ;;  %v1351_v55 = vrot.slane %v1337_v49, %v2461_v38  ;;  %v1360_v56 = vrot.slane %v1352_v51, %v2461_v38  ;;  %v1367_v57 = vrot.slane %v1353_v52, %v2461_v38 }
 0x45e   : > { %v1372_v58 = vcombine.low %v1344_v54, %v1351_v55  ;;  %v1708_v59 = vcombine.high %v1344_v54, %v1351_v55  ;;  %v1388_v60 = vcombine.low %v1360_v56, %v1367_v57  ;;  %v1709_v61 = vcombine.high %v1360_v56, %v1367_v57 }
 0x460   : > { %v1379_v63 = vrot.slane %v1372_v58, %v2456_v33  ;;  %v1387_v28 = vrot.slane %v1708_v59, %v2456_v33  ;;  %v1395_v50 = vrot.slane %v1388_v60, %v2456_v33  ;;  %v1403_v1 = vrot.slane %v1709_v61, %v2456_v33 }
 0x462   : > { %v1405_v2 = vcombine.high %v1379_v63, %v1387_v28  ;;  %v1421_v3 = vcombine.high %v1395_v50, %v1403_v1  ;;  %v1404_v4 = vcombine.low %v1379_v63, %v1387_v28  ;;  %v1420_v5 = vcombine.low %v1395_v50, %v1403_v1 }
 0x464   : > { %v1419_v6 = vrot.slane %v1405_v2, %v2461_v38  ;;  %v1435_v7 = vrot.slane %v1421_v3, %v2461_v38  ;;  %v1412_v0 = vrot.slane %v1404_v4, %v2461_v38  ;;  %v1428_v8 = vrot.slane %v1420_v5, %v2461_v38 }
 0x466   : > { %v1438_v9 = vcombine.low %v1419_v6, %v1435_v7  ;;  %v1437_v10 = vcombine.high %v1412_v0, %v1428_v8  ;;  %v1439_v11 = vcombine.high %v1419_v6, %v1435_v7  ;;  %v1436_v12 = vcombine.low %v1412_v0, %v1428_v8 }
 0x468   : > { %1445 = vrot.lane.b32.xlu0 %v1438_v9, %s2208_s20  ;;  %1441 = vrot.lane.b32.xlu1 %v1437_v10, %s2209_s21 }
 0x46c   : > { %1449 = vrot.lane.b32.xlu1 %v1439_v11, %s2210_s12 }
 0x4da   : > { %v1442_v33 = vpop.permute.xlu1 %1441  ;;  %v1446_v13 = vpop.permute.xlu0 %1445 }
 0x4db   : > { %v1452_v15 = vsel %vm850_vm4, %v1436_v12, %v1442_v33 }
 0x4dc   : > { %v1454_v38 = vsel %vm1453_vm7, %v1452_v15, %v1446_v13 }
 0x4de   : > { %v1450_v16 = vpop.permute.xlu1 %1449 }
 0x4df   : > { %v1456_v17 = vsel %vm1455_vm8, %v1454_v38, %v1450_v16 }
 0x4e0   : > { %v1457_v18 = vpack.c.bf16 %v1456_v17, %v1456_v17 }
 0x4e2   : > { %1813 = vmatmul.mubr.msk.bf16.vlgmr.msra.gmra.mxu0 %vm452_vm1, %v1457_v18 }
 0x5a2   : > { %v1518_v20 = vpop.f32.mrf.mxu0 }
 0x5a3   : > { %v1519_v21 = vadd.f32 %v1710_v19, %v1518_v20 }
 0x5a4   : > { %v1814_v22 = vpop.f32.mrf.mxu0 }
 0x5a5   : > { %1524 = vst.msk [vmem:[%s420_s29] sm:$0xff] %vm452_vm1, %v1519_v21 }
 0x5a6   : > { %v1521_v23 = vpop.f32.mrf.mxu0 }
 0x5a7   : > { %2108 = shalt.err (!%p2105_p2)
}
 0x5a8   : > { %s2109_s17 = scalar_lea.hbm %s2574_s16, 128  ;;  %s2113_s24 = scalar_lea.hbm %s2631_s8, 256 }
 0x5a9   : > { %p2110_p4 = scmp.ne.s32.totalorder %s2574_s16, %s2109_s17  ;;  %p2114_p7 = scmp.lt.s32.totalorder %s2574_s16, %s2631_s8 }
 0x5aa   : > { %p2115_p6 = scmp.lt.s32.totalorder %s2113_s24, %s2109_s17 }
 0x5ab   : > { %p2111_p1 = pnand %p2110_p4, %p2353_p5 }
 0x5ac   : > { %p2116_p12 = por %p2115_p6, %p2114_p7 }
 0x5ad   : > { %p2112_p8 = pneg %p2111_p1 }
 0x5af   : > { %p2117_p0 = pnand %p2116_p12, %p2112_p8 }
 0x5b1   : > { %2120 = shalt.err (!%p2117_p0)
}
 0x5b2   : > { %1832 = dma.vmem_to_hbm [thread:$0]  (%p2353_p5), %s2576_s11, 128, %s2574_s16, %s1526_s30   ;;  %v1815_v24 = vpop.f32.mrf.mxu0 }
 0x5b3 PF: > { %s2662_s21 = sld [smem:[#allocation20_spill]]  ;;  %s1553_s12 = sand.u32 1, %s2167_s27  }
 0x5b4   : > { %p2663_p3 = scmp.ne.s32.totalorder %s2645_s14, 0  ;;  %s1554_s10 = scalar_lea.sflag [#allocation6], %s1553_s12 }
 0x5b9   : > { %p2664_p10 = scmp.ge.s32.totalorder %s2662_s21, 2 }
 0x5bb   : > { %p1852_p11 = pnand %p2664_p10, %p2663_p3 }
 0x5bd   : > { %p1853_p9 = pneg %p1852_p11 }
 0x5bf   : > { %2162 = dma.done.wait (%p1853_p9), %s1554_s10, 128  }
 0x5c0   : > { %2164 = vsyncadd (%p1853_p9), %s1554_s10, 4294967168  ;;  %s28_s10 = sadd.s32 1, %s2662_s21   ;;  %s2665_s18 = sld [smem:[#allocation19_spill]] }
 0x5c1   : > { %p25_p13 = scmp.ge.s32.totalorder %s28_s10, 4   ;;  %s2666_s29 = sld [smem:[#allocation22_spill]] }
 0x5c2   : > { %s2667_s0 = sld [smem:[#allocation21_spill]]  ;;  %s2668_s27 = smov %s2171_s28 }
 0x5c3   : > { %s2670_s30 = smov %s2183_s9 }
 0x5c4   :  { %27 = sbr.rel (!%p25_p13) target bundleno = 14 (0xe), region = 133 }
 0x5c6   : > { %s2669_s28 = smov %s2665_s18 }
 0x5c8   : > { %s2671_s9 = smov %s2667_s0 }
 0x5c9   :  { %1559 = vsyncpa [#allocation5], 1 }
 0x5ca   :  { %1561 = vsyncpa [#allocation5 + $0x1], 1 }
 0x5cb   :  { %1562 = vsyncpa [#allocation8], 1 }
 0x5cc   :  { %1564 = vsyncpa [#allocation8 + $0x1], 1 }
 0x5cd   :  { %1565 = vsyncpa [#allocation11], 1 }
 0x5ce   :  { %1566 = vsyncpa [#allocation6], 1 }
 0x5cf   :  { %1568 = vsyncpa [#allocation6 + $0x1], 1 }

</bundles_post_ra>
